<compile_context>
chip_gen: v7x
topology: tpu7x:2x2x1
jax: 0.10.0
libtpu: 0.0.40
codegen_flags: <defaults>
</compile_context>

<pallas_src>
import jax
import jax.numpy as jnp
from jax import lax
from jax.experimental import pallas as pl
from jax.experimental.pallas import tpu as pltpu

HIDDEN = 28        # true hidden size (PyTorch)
HP = 32            # padded hidden size per gate (4 * 32 = 128 lanes = 1 vreg row)
G4 = 4 * HP        # fused gate width, lane blocks [i | f | g | o]
BP = 8             # batch padded to a full sublane group
KP = 8             # per-LSTM padded input width (features + bias ones column)
ENC_IN = 7
DEC_IN = 6
OUT_DIM = 6


# ----------------------------- Pallas kernel --------------------------------
def _lstm_kernel(x_comb_ref, h0_ref, c0_ref, wih_ref, whh_e_ref, whh_d_ref,
                 w_out_ref, b_out_ref, out_ref):
    """Encoder recurrence -> decoder recurrence -> ReLU -> Linear, fully fused."""
    n_dec = out_ref.shape[0]                     # T_dec * BP
    n_enc = x_comb_ref.shape[0] - n_dec          # T_enc * BP
    t_enc = n_enc // BP
    t_dec = n_dec // BP

    # ---- hoisted weight loads (once, outside all time loops) ----
    whh_e = whh_e_ref[...]                       # (HP, 128), pre-scaled, rows 28..31 zero
    whh_d = whh_d_ref[...]                       # (HP, 128)
    w_out = w_out_ref[...]                       # (HP, OUT_DIM), rows 28..31 zero
    b_out = b_out_ref[...]                       # (1, OUT_DIM)

    # ---- gate affine constants: sigmoid(x) = 0.5*tanh(x/2) + 0.5 -------------
    # The x/2 pre-scale is folded into wih/whh/b offline; only the post-tanh
    # affine remains.  Built at full (BP, G4) so no per-step broadcast_in_dim.
    lane = lax.broadcasted_iota(jnp.int32, (BP, G4), 1)
    is_g = jnp.logical_and(lane >= 2 * HP, lane < 3 * HP)
    scale_out = jnp.where(is_g, jnp.float32(1.0), jnp.float32(0.5))
    offset = jnp.where(is_g, jnp.float32(0.0), jnp.float32(0.5))

    # ---- both input projections (+ biases) in ONE MXU pass -------------------
    # x_comb is block-diagonal [xe | 1 | 0 ; 0 | xd | 0 | 1]; wih stacks
    # [wih_e ; b_e ; wih_d ; 0 ; b_d] (all pre-scaled by the per-gate scale-in),
    # so x_proj already equals scale_in * (x @ Wih + b) for every timestep row.
    x_proj = jnp.dot(x_comb_ref[...], wih_ref[...],
                     preferred_element_type=jnp.float32)         # (n_enc+n_dec, 128)

    def step(x_t, h, c, whh):
        # Serial critical path per step: MXU (h@whh) -> VPU add -> EUP tanh ->
        # VPU affine -> 1 lane-rotate -> VPU muls/add -> EUP tanh -> VPU mul.
        pre = x_t + jnp.dot(h, whh, preferred_element_type=jnp.float32)   # (BP, 128)
        act = jnp.tanh(pre) * scale_out + offset        # sigmoid on i|f|o, tanh on g
        i_g = act[:, 0 * HP:1 * HP]
        f_g = act[:, 1 * HP:2 * HP]
        g_g = act[:, 2 * HP:3 * HP]
        o_g = act[:, 3 * HP:4 * HP]
        c_new = f_g * c + i_g * g_g
        h_new = o_g * jnp.tanh(c_new)
        return h_new, c_new

    # initial state: (BP, HP), padding rows/lanes zero (provably inert)
    h = h0_ref[...]
    c = c0_ref[...]

    # ---- encoder recurrence (fully unrolled; only final (h, c) matters) ----
    for t in range(t_enc):
        h, c = step(x_proj[t * BP:(t + 1) * BP, :], h, c, whh_e)

    # ---- decoder recurrence (fully unrolled; collect hidden states) ----
    hs = []
    for t in range(t_dec):
        h, c = step(x_proj[n_enc + t * BP:n_enc + (t + 1) * BP, :], h, c, whh_d)
        hs.append(h)

    # ---- ReLU + output Linear: one matmul, ONE contiguous store ----
    h_all = jnp.concatenate(hs, axis=0)                              # (T_dec*BP, HP)
    y = jnp.dot(jnp.maximum(h_all, 0.0), w_out,
                preferred_element_type=jnp.float32) + b_out          # (T_dec*BP, OUT_DIM)
    out_ref[...] = y.astype(out_ref.dtype)


# ------------------------------- wrapper -------------------------------------
def _prep_inputs(inputs, inputs_):
    """(B,T,F) batch-first -> time-major, batch padded to BP, enc/dec stacked
    block-diagonally with a ones column feeding the fused bias rows."""
    B = inputs.shape[0]

    def tm_pad(x):                                   # (B, T, F) -> (T*BP, F)
        x = jnp.transpose(x, (1, 0, 2))
        x = jnp.pad(x, ((0, 0), (0, BP - B), (0, 0)))
        return x.reshape(x.shape[0] * BP, x.shape[2])

    xe = tm_pad(inputs)                              # (T_enc*BP, ENC_IN)
    xd = tm_pad(inputs_)                             # (T_dec*BP, DEC_IN)
    ne, nd = xe.shape[0], xd.shape[0]
    top = jnp.concatenate(                            # cols 0..6 xe, col 7 ones, cols 8..15 zero
        [xe, jnp.ones((ne, 1), jnp.float32), jnp.zeros((ne, KP), jnp.float32)], axis=1)
    bot = jnp.concatenate(                            # cols 8..13 xd, col 14 zero, col 15 ones
        [jnp.zeros((nd, KP), jnp.float32), xd,
         jnp.zeros((nd, 1), jnp.float32), jnp.ones((nd, 1), jnp.float32)], axis=1)
    return jnp.concatenate([top, bot], axis=0)       # (ne+nd, 2*KP)


@jax.jit
def maize_lstm_forward(inputs, inputs_, h0, c0, fused):
    """inputs: (B, T_enc, 7), inputs_: (B, T_dec, 6), h0/c0: (B, 28) -> (B, T_dec, 6)."""
    B, _, _ = inputs.shape
    _, t_dec, _ = inputs_.shape

    x_comb = _prep_inputs(inputs, inputs_)                       # (T_e*BP + T_d*BP, 16)
    h0p = jnp.pad(h0, ((0, BP - B), (0, HP - HIDDEN)))           # (BP, HP)
    c0p = jnp.pad(c0, ((0, BP - B), (0, HP - HIDDEN)))

    vmem = pl.BlockSpec(memory_space=pltpu.MemorySpace.VMEM)
    y = pl.pallas_call(
        _lstm_kernel,
        out_shape=jax.ShapeDtypeStruct((t_dec * BP, OUT_DIM), jnp.float32),
        in_specs=[vmem] * 8,
        out_specs=vmem,
    )(x_comb, h0p, c0p,
      fused["wih_comb"], fused["whh_e"], fused["whh_d"],
      fused["w_out"], fused["b_out"])

    # layout plumbing back to batch-first happens outside the kernel
    y = y.reshape(t_dec, BP, OUT_DIM)
    return jnp.transpose(y, (1, 0, 2))[:B]


# ------------------------- deterministic param init --------------------------
def init_params(key):
    """Per-gate (PyTorch-like) parameters; used by the pure-JAX reference."""
    k = 1.0 / jnp.sqrt(jnp.float32(HIDDEN))
    keys = jax.random.split(key, 10)

    def u(kk, shape):
        return jax.random.uniform(kk, shape, jnp.float32, -k, k)

    # stacked per-gate weights: (4, in, H) / (4, H, H); combined biases (4, 1, H)
    wih_e = u(keys[0], (4, ENC_IN, HIDDEN))
    whh_e = u(keys[1], (4, HIDDEN, HIDDEN))
    b_e = u(keys[2], (4, 1, HIDDEN)) + u(keys[3], (4, 1, HIDDEN))   # b_ih + b_hh

    wih_d = u(keys[4], (4, DEC_IN, HIDDEN))
    whh_d = u(keys[5], (4, HIDDEN, HIDDEN))
    b_d = u(keys[6], (4, 1, HIDDEN)) + u(keys[7], (4, 1, HIDDEN))

    w_out = jax.random.uniform(keys[8], (HIDDEN, OUT_DIM), jnp.float32, -k, k)
    b_out = jax.random.uniform(keys[9], (1, OUT_DIM), jnp.float32, -k, k)

    return dict(wih_e=wih_e, whh_e=whh_e, b_e=b_e,
                wih_d=wih_d, whh_d=whh_d, b_d=b_d,
                w_out=w_out, b_out=b_out)


def fuse_params(p):
    """Per-gate params -> fused 128-lane [i|f|g|o], 32-padded kernel layout.

    The sigmoid pre-scale (x/2) is folded into wih/whh/b exactly (power-of-two
    scaling), so the kernel's single-tanh activation needs no pre-multiply."""
    padc = HP - HIDDEN
    # per-lane pre-scale: 0.5 on sigmoid gates (i, f, o), 1.0 on the tanh gate (g)
    scale_in = jnp.concatenate([jnp.full((HP,), 0.5, jnp.float32),
                                jnp.full((HP,), 0.5, jnp.float32),
                                jnp.ones((HP,), jnp.float32),
                                jnp.full((HP,), 0.5, jnp.float32)])

    def pad_lane(w):                      # (..., H) -> (..., HP), zero padded
        return jnp.pad(w, [(0, 0)] * (w.ndim - 1) + [(0, padc)])

    def fuse_gates(w):                    # (4, in, H) -> (in, 4*HP), [i|f|g|o]
        return jnp.concatenate([pad_lane(w[g]) for g in range(4)], axis=-1)

    wih_e = fuse_gates(p["wih_e"]) * scale_in                       # (ENC_IN, 128)
    wih_d = fuse_gates(p["wih_d"]) * scale_in                       # (DEC_IN, 128)
    b_e = fuse_gates(p["b_e"]) * scale_in                           # (1, 128)
    b_d = fuse_gates(p["b_d"]) * scale_in                           # (1, 128)
    whh_e = jnp.pad(fuse_gates(p["whh_e"]), ((0, padc), (0, 0))) * scale_in   # (HP, 128)
    whh_d = jnp.pad(fuse_gates(p["whh_d"]), ((0, padc), (0, 0))) * scale_in

    # stacked input-projection weight (incl. bias rows), matching _prep_inputs:
    #   rows 0..6 wih_e, row 7 b_e, rows 8..13 wih_d, row 14 zero, row 15 b_d
    wih_comb = jnp.concatenate(
        [wih_e, b_e, wih_d, jnp.zeros((1, G4), jnp.float32), b_d], axis=0)    # (2*KP, 128)

    w_out = jnp.pad(p["w_out"], ((0, padc), (0, 0)))                # (HP, OUT_DIM)
    return dict(wih_comb=wih_comb, whh_e=whh_e, whh_d=whh_d,
                w_out=w_out, b_out=p["b_out"])


# --------------------------- pure-JAX reference -------------------------------
def _lstm_ref(x, h, c, wih, whh, b):
    def step(carry, x_t):
        h, c = carry
        pre = [x_t @ wih[g] + h @ whh[g] + b[g] for g in range(4)]
        i = jax.nn.sigmoid(pre[0])
        f = jax.nn.sigmoid(pre[1])
        g = jnp.tanh(pre[2])
        o = jax.nn.sigmoid(pre[3])
        c = f * c + i * g
        h = o * jnp.tanh(c)
        return (h, c), h

    (h, c), hs = lax.scan(step, (h, c), jnp.transpose(x, (1, 0, 2)))
    return jnp.transpose(hs, (1, 0, 2)), h, c


def maize_lstm_ref(inputs, inputs_, h0, c0, p):
    _, h1, c1 = _lstm_ref(inputs, h0, c0, p["wih_e"], p["whh_e"], p["b_e"])
    dec_out, _, _ = _lstm_ref(inputs_, h1, c1, p["wih_d"], p["whh_d"], p["b_d"])
    return jnp.maximum(dec_out, 0.0) @ p["w_out"] + p["b_out"]


# ---------------------------------- main --------------------------------------
if __name__ == "__main__":
    key = jax.random.PRNGKey(0)
    k_in, k_in2, k_h0, k_c0, k_par = jax.random.split(key, 5)

    B, T_ENC, T_DEC = 2, 8, 5
    inputs = jax.random.normal(k_in, (B, T_ENC, ENC_IN), jnp.float32)
    inputs_ = jax.random.normal(k_in2, (B, T_DEC, DEC_IN), jnp.float32)

    # forward() in PyTorch draws fresh torch.randn h0/c0 each call; made
    # deterministic here by fixing the key and passing them explicitly.
    h0 = jax.random.normal(k_h0, (B, HIDDEN), jnp.float32)
    c0 = jax.random.normal(k_c0, (B, HIDDEN), jnp.float32)

    params = init_params(k_par)
    fused = fuse_params(params)

    out = maize_lstm_forward(inputs, inputs_, h0, c0, fused)
    out = jax.block_until_ready(out)

    ref = maize_lstm_ref(inputs, inputs_, h0, c0, params)
    assert out.shape == (B, T_DEC, OUT_DIM)
    assert jnp.allclose(out, ref, atol=2e-5, rtol=2e-5), "mismatch vs reference"

    print("KERNEL_OK")
</pallas_src>

<mosaic_0001>
module attributes {stable_mosaic.version = 11 : i64} {
  func.func @_lstm_kernel(%arg0: memref<104x16xf32, #tpu.memory_space<vmem>>, %arg1: memref<8x32xf32, #tpu.memory_space<vmem>>, %arg2: memref<8x32xf32, #tpu.memory_space<vmem>>, %arg3: memref<16x128xf32, #tpu.memory_space<vmem>>, %arg4: memref<32x128xf32, #tpu.memory_space<vmem>>, %arg5: memref<32x128xf32, #tpu.memory_space<vmem>>, %arg6: memref<32x6xf32, #tpu.memory_space<vmem>>, %arg7: memref<1x6xf32, #tpu.memory_space<vmem>>, %arg8: memref<40x6xf32, #tpu.memory_space<vmem>>) attributes {dimension_semantics = [], scalar_prefetch = 0 : i64, scratch_operands = 0 : i64, tpu.core_type = #tpu.core_type<tc>} {
    %c0 = arith.constant 0 : index
    %c0_0 = arith.constant 0 : index
    %0 = vector.load %arg4[%c0, %c0_0] : memref<32x128xf32, #tpu.memory_space<vmem>>, vector<32x128xf32>
    %c0_1 = arith.constant 0 : index
    %c0_2 = arith.constant 0 : index
    %1 = vector.load %arg5[%c0_1, %c0_2] : memref<32x128xf32, #tpu.memory_space<vmem>>, vector<32x128xf32>
    %c0_3 = arith.constant 0 : index
    %c0_4 = arith.constant 0 : index
    %2 = vector.load %arg6[%c0_3, %c0_4] : memref<32x6xf32, #tpu.memory_space<vmem>>, vector<32x6xf32>
    %c0_5 = arith.constant 0 : index
    %c0_6 = arith.constant 0 : index
    %3 = vector.load %arg7[%c0_5, %c0_6] : memref<1x6xf32, #tpu.memory_space<vmem>>, vector<1x6xf32>
    %4 = tpu.iota {dimensions = array<i32: 1>} : vector<8x128xi32>
    %c64_i32 = arith.constant 64 : i32
    %5 = vector.broadcast %c64_i32 : i32 to vector<8x128xi32>
    %6 = arith.cmpi sge, %4, %5 : vector<8x128xi32>
    %c96_i32 = arith.constant 96 : i32
    %7 = vector.broadcast %c96_i32 : i32 to vector<8x128xi32>
    %8 = arith.cmpi slt, %4, %7 : vector<8x128xi32>
    %9 = arith.andi %6, %8 : vector<8x128xi1>
    %cst = arith.constant 1.000000e+00 : f32
    %cst_7 = arith.constant 5.000000e-01 : f32
    %10 = vector.broadcast %cst : f32 to vector<8x128xf32>
    %11 = vector.broadcast %cst_7 : f32 to vector<8x128xf32>
    %12 = arith.select %9, %10, %11 : vector<8x128xi1>, vector<8x128xf32>
    %cst_8 = arith.constant 0.000000e+00 : f32
    %cst_9 = arith.constant 5.000000e-01 : f32
    %13 = vector.broadcast %cst_8 : f32 to vector<8x128xf32>
    %14 = vector.broadcast %cst_9 : f32 to vector<8x128xf32>
    %15 = arith.select %9, %13, %14 : vector<8x128xi1>, vector<8x128xf32>
    %c0_10 = arith.constant 0 : index
    %c0_11 = arith.constant 0 : index
    %16 = vector.load %arg0[%c0_10, %c0_11] : memref<104x16xf32, #tpu.memory_space<vmem>>, vector<104x16xf32>
    %c0_12 = arith.constant 0 : index
    %c0_13 = arith.constant 0 : index
    %17 = vector.load %arg3[%c0_12, %c0_13] : memref<16x128xf32, #tpu.memory_space<vmem>>, vector<16x128xf32>
    %cst_14 = arith.constant dense<0.000000e+00> : vector<104x128xf32>
    %18 = tpu.matmul %16, %17, %cst_14 {dimension_numbers = #tpu.dot_dimension_numbers<[1], [0], [0], [1], [0, 0, 1, 1], [], []>} : vector<104x16xf32>, vector<16x128xf32>, vector<104x128xf32> -> vector<104x128xf32>
    %c0_15 = arith.constant 0 : index
    %c0_16 = arith.constant 0 : index
    %19 = vector.load %arg1[%c0_15, %c0_16] : memref<8x32xf32, #tpu.memory_space<vmem>>, vector<8x32xf32>
    %c0_17 = arith.constant 0 : index
    %c0_18 = arith.constant 0 : index
    %20 = vector.load %arg2[%c0_17, %c0_18] : memref<8x32xf32, #tpu.memory_space<vmem>>, vector<8x32xf32>
    %21 = vector.extract_strided_slice %18 {offsets = [0, 0], sizes = [8, 128], strides = [1, 1]} : vector<104x128xf32> to vector<8x128xf32>
    %cst_19 = arith.constant dense<0.000000e+00> : vector<8x128xf32>
    %22 = tpu.matmul %19, %0, %cst_19 {dimension_numbers = #tpu.dot_dimension_numbers<[1], [0], [0], [1], [0, 0, 1, 1], [], []>} : vector<8x32xf32>, vector<32x128xf32>, vector<8x128xf32> -> vector<8x128xf32>
    %23 = arith.addf %21, %22 : vector<8x128xf32>
    %24 = math.tanh %23 : vector<8x128xf32>
    %25 = arith.mulf %24, %12 : vector<8x128xf32>
    %26 = arith.addf %25, %15 : vector<8x128xf32>
    %27 = vector.extract_strided_slice %26 {offsets = [0, 0], sizes = [8, 32], strides = [1, 1]} : vector<8x128xf32> to vector<8x32xf32>
    %28 = vector.extract_strided_slice %26 {offsets = [0, 32], sizes = [8, 32], strides = [1, 1]} : vector<8x128xf32> to vector<8x32xf32>
    %29 = vector.extract_strided_slice %26 {offsets = [0, 64], sizes = [8, 32], strides = [1, 1]} : vector<8x128xf32> to vector<8x32xf32>
    %30 = vector.extract_strided_slice %26 {offsets = [0, 96], sizes = [8, 32], strides = [1, 1]} : vector<8x128xf32> to vector<8x32xf32>
    %31 = arith.mulf %28, %20 : vector<8x32xf32>
    %32 = arith.mulf %27, %29 : vector<8x32xf32>
    %33 = arith.addf %31, %32 : vector<8x32xf32>
    %34 = math.tanh %33 : vector<8x32xf32>
    %35 = arith.mulf %30, %34 : vector<8x32xf32>
    %36 = vector.extract_strided_slice %18 {offsets = [8, 0], sizes = [8, 128], strides = [1, 1]} : vector<104x128xf32> to vector<8x128xf32>
    %cst_20 = arith.constant dense<0.000000e+00> : vector<8x128xf32>
    %37 = tpu.matmul %35, %0, %cst_20 {dimension_numbers = #tpu.dot_dimension_numbers<[1], [0], [0], [1], [0, 0, 1, 1], [], []>} : vector<8x32xf32>, vector<32x128xf32>, vector<8x128xf32> -> vector<8x128xf32>
    %38 = arith.addf %36, %37 : vector<8x128xf32>
    %39 = math.tanh %38 : vector<8x128xf32>
    %40 = arith.mulf %39, %12 : vector<8x128xf32>
    %41 = arith.addf %40, %15 : vector<8x128xf32>
    %42 = vector.extract_strided_slice %41 {offsets = [0, 0], sizes = [8, 32], strides = [1, 1]} : vector<8x128xf32> to vector<8x32xf32>
    %43 = vector.extract_strided_slice %41 {offsets = [0, 32], sizes = [8, 32], strides = [1, 1]} : vector<8x128xf32> to vector<8x32xf32>
    %44 = vector.extract_strided_slice %41 {offsets = [0, 64], sizes = [8, 32], strides = [1, 1]} : vector<8x128xf32> to vector<8x32xf32>
    %45 = vector.extract_strided_slice %41 {offsets = [0, 96], sizes = [8, 32], strides = [1, 1]} : vector<8x128xf32> to vector<8x32xf32>
    %46 = arith.mulf %43, %33 : vector<8x32xf32>
    %47 = arith.mulf %42, %44 : vector<8x32xf32>
    %48 = arith.addf %46, %47 : vector<8x32xf32>
    %49 = math.tanh %48 : vector<8x32xf32>
    %50 = arith.mulf %45, %49 : vector<8x32xf32>
    %51 = vector.extract_strided_slice %18 {offsets = [16, 0], sizes = [8, 128], strides = [1, 1]} : vector<104x128xf32> to vector<8x128xf32>
    %cst_21 = arith.constant dense<0.000000e+00> : vector<8x128xf32>
    %52 = tpu.matmul %50, %0, %cst_21 {dimension_numbers = #tpu.dot_dimension_numbers<[1], [0], [0], [1], [0, 0, 1, 1], [], []>} : vector<8x32xf32>, vector<32x128xf32>, vector<8x128xf32> -> vector<8x128xf32>
    %53 = arith.addf %51, %52 : vector<8x128xf32>
    %54 = math.tanh %53 : vector<8x128xf32>
    %55 = arith.mulf %54, %12 : vector<8x128xf32>
    %56 = arith.addf %55, %15 : vector<8x128xf32>
    %57 = vector.extract_strided_slice %56 {offsets = [0, 0], sizes = [8, 32], strides = [1, 1]} : vector<8x128xf32> to vector<8x32xf32>
    %58 = vector.extract_strided_slice %56 {offsets = [0, 32], sizes = [8, 32], strides = [1, 1]} : vector<8x128xf32> to vector<8x32xf32>
    %59 = vector.extract_strided_slice %56 {offsets = [0, 64], sizes = [8, 32], strides = [1, 1]} : vector<8x128xf32> to vector<8x32xf32>
    %60 = vector.extract_strided_slice %56 {offsets = [0, 96], sizes = [8, 32], strides = [1, 1]} : vector<8x128xf32> to vector<8x32xf32>
    %61 = arith.mulf %58, %48 : vector<8x32xf32>
    %62 = arith.mulf %57, %59 : vector<8x32xf32>
    %63 = arith.addf %61, %62 : vector<8x32xf32>
    %64 = math.tanh %63 : vector<8x32xf32>
    %65 = arith.mulf %60, %64 : vector<8x32xf32>
    %66 = vector.extract_strided_slice %18 {offsets = [24, 0], sizes = [8, 128], strides = [1, 1]} : vector<104x128xf32> to vector<8x128xf32>
    %cst_22 = arith.constant dense<0.000000e+00> : vector<8x128xf32>
    %67 = tpu.matmul %65, %0, %cst_22 {dimension_numbers = #tpu.dot_dimension_numbers<[1], [0], [0], [1], [0, 0, 1, 1], [], []>} : vector<8x32xf32>, vector<32x128xf32>, vector<8x128xf32> -> vector<8x128xf32>
    %68 = arith.addf %66, %67 : vector<8x128xf32>
    %69 = math.tanh %68 : vector<8x128xf32>
    %70 = arith.mulf %69, %12 : vector<8x128xf32>
    %71 = arith.addf %70, %15 : vector<8x128xf32>
    %72 = vector.extract_strided_slice %71 {offsets = [0, 0], sizes = [8, 32], strides = [1, 1]} : vector<8x128xf32> to vector<8x32xf32>
    %73 = vector.extract_strided_slice %71 {offsets = [0, 32], sizes = [8, 32], strides = [1, 1]} : vector<8x128xf32> to vector<8x32xf32>
    %74 = vector.extract_strided_slice %71 {offsets = [0, 64], sizes = [8, 32], strides = [1, 1]} : vector<8x128xf32> to vector<8x32xf32>
    %75 = vector.extract_strided_slice %71 {offsets = [0, 96], sizes = [8, 32], strides = [1, 1]} : vector<8x128xf32> to vector<8x32xf32>
    %76 = arith.mulf %73, %63 : vector<8x32xf32>
    %77 = arith.mulf %72, %74 : vector<8x32xf32>
    %78 = arith.addf %76, %77 : vector<8x32xf32>
    %79 = math.tanh %78 : vector<8x32xf32>
    %80 = arith.mulf %75, %79 : vector<8x32xf32>
    %81 = vector.extract_strided_slice %18 {offsets = [32, 0], sizes = [8, 128], strides = [1, 1]} : vector<104x128xf32> to vector<8x128xf32>
    %cst_23 = arith.constant dense<0.000000e+00> : vector<8x128xf32>
    %82 = tpu.matmul %80, %0, %cst_23 {dimension_numbers = #tpu.dot_dimension_numbers<[1], [0], [0], [1], [0, 0, 1, 1], [], []>} : vector<8x32xf32>, vector<32x128xf32>, vector<8x128xf32> -> vector<8x128xf32>
    %83 = arith.addf %81, %82 : vector<8x128xf32>
    %84 = math.tanh %83 : vector<8x128xf32>
    %85 = arith.mulf %84, %12 : vector<8x128xf32>
    %86 = arith.addf %85, %15 : vector<8x128xf32>
    %87 = vector.extract_strided_slice %86 {offsets = [0, 0], sizes = [8, 32], strides = [1, 1]} : vector<8x128xf32> to vector<8x32xf32>
    %88 = vector.extract_strided_slice %86 {offsets = [0, 32], sizes = [8, 32], strides = [1, 1]} : vector<8x128xf32> to vector<8x32xf32>
    %89 = vector.extract_strided_slice %86 {offsets = [0, 64], sizes = [8, 32], strides = [1, 1]} : vector<8x128xf32> to vector<8x32xf32>
    %90 = vector.extract_strided_slice %86 {offsets = [0, 96], sizes = [8, 32], strides = [1, 1]} : vector<8x128xf32> to vector<8x32xf32>
    %91 = arith.mulf %88, %78 : vector<8x32xf32>
    %92 = arith.mulf %87, %89 : vector<8x32xf32>
    %93 = arith.addf %91, %92 : vector<8x32xf32>
    %94 = math.tanh %93 : vector<8x32xf32>
    %95 = arith.mulf %90, %94 : vector<8x32xf32>
    %96 = vector.extract_strided_slice %18 {offsets = [40, 0], sizes = [8, 128], strides = [1, 1]} : vector<104x128xf32> to vector<8x128xf32>
    %cst_24 = arith.constant dense<0.000000e+00> : vector<8x128xf32>
    %97 = tpu.matmul %95, %0, %cst_24 {dimension_numbers = #tpu.dot_dimension_numbers<[1], [0], [0], [1], [0, 0, 1, 1], [], []>} : vector<8x32xf32>, vector<32x128xf32>, vector<8x128xf32> -> vector<8x128xf32>
    %98 = arith.addf %96, %97 : vector<8x128xf32>
    %99 = math.tanh %98 : vector<8x128xf32>
    %100 = arith.mulf %99, %12 : vector<8x128xf32>
    %101 = arith.addf %100, %15 : vector<8x128xf32>
    %102 = vector.extract_strided_slice %101 {offsets = [0, 0], sizes = [8, 32], strides = [1, 1]} : vector<8x128xf32> to vector<8x32xf32>
    %103 = vector.extract_strided_slice %101 {offsets = [0, 32], sizes = [8, 32], strides = [1, 1]} : vector<8x128xf32> to vector<8x32xf32>
    %104 = vector.extract_strided_slice %101 {offsets = [0, 64], sizes = [8, 32], strides = [1, 1]} : vector<8x128xf32> to vector<8x32xf32>
    %105 = vector.extract_strided_slice %101 {offsets = [0, 96], sizes = [8, 32], strides = [1, 1]} : vector<8x128xf32> to vector<8x32xf32>
    %106 = arith.mulf %103, %93 : vector<8x32xf32>
    %107 = arith.mulf %102, %104 : vector<8x32xf32>
    %108 = arith.addf %106, %107 : vector<8x32xf32>
    %109 = math.tanh %108 : vector<8x32xf32>
    %110 = arith.mulf %105, %109 : vector<8x32xf32>
    %111 = vector.extract_strided_slice %18 {offsets = [48, 0], sizes = [8, 128], strides = [1, 1]} : vector<104x128xf32> to vector<8x128xf32>
    %cst_25 = arith.constant dense<0.000000e+00> : vector<8x128xf32>
    %112 = tpu.matmul %110, %0, %cst_25 {dimension_numbers = #tpu.dot_dimension_numbers<[1], [0], [0], [1], [0, 0, 1, 1], [], []>} : vector<8x32xf32>, vector<32x128xf32>, vector<8x128xf32> -> vector<8x128xf32>
    %113 = arith.addf %111, %112 : vector<8x128xf32>
    %114 = math.tanh %113 : vector<8x128xf32>
    %115 = arith.mulf %114, %12 : vector<8x128xf32>
    %116 = arith.addf %115, %15 : vector<8x128xf32>
    %117 = vector.extract_strided_slice %116 {offsets = [0, 0], sizes = [8, 32], strides = [1, 1]} : vector<8x128xf32> to vector<8x32xf32>
    %118 = vector.extract_strided_slice %116 {offsets = [0, 32], sizes = [8, 32], strides = [1, 1]} : vector<8x128xf32> to vector<8x32xf32>
    %119 = vector.extract_strided_slice %116 {offsets = [0, 64], sizes = [8, 32], strides = [1, 1]} : vector<8x128xf32> to vector<8x32xf32>
    %120 = vector.extract_strided_slice %116 {offsets = [0, 96], sizes = [8, 32], strides = [1, 1]} : vector<8x128xf32> to vector<8x32xf32>
    %121 = arith.mulf %118, %108 : vector<8x32xf32>
    %122 = arith.mulf %117, %119 : vector<8x32xf32>
    %123 = arith.addf %121, %122 : vector<8x32xf32>
    %124 = math.tanh %123 : vector<8x32xf32>
    %125 = arith.mulf %120, %124 : vector<8x32xf32>
    %126 = vector.extract_strided_slice %18 {offsets = [56, 0], sizes = [8, 128], strides = [1, 1]} : vector<104x128xf32> to vector<8x128xf32>
    %cst_26 = arith.constant dense<0.000000e+00> : vector<8x128xf32>
    %127 = tpu.matmul %125, %0, %cst_26 {dimension_numbers = #tpu.dot_dimension_numbers<[1], [0], [0], [1], [0, 0, 1, 1], [], []>} : vector<8x32xf32>, vector<32x128xf32>, vector<8x128xf32> -> vector<8x128xf32>
    %128 = arith.addf %126, %127 : vector<8x128xf32>
    %129 = math.tanh %128 : vector<8x128xf32>
    %130 = arith.mulf %129, %12 : vector<8x128xf32>
    %131 = arith.addf %130, %15 : vector<8x128xf32>
    %132 = vector.extract_strided_slice %131 {offsets = [0, 0], sizes = [8, 32], strides = [1, 1]} : vector<8x128xf32> to vector<8x32xf32>
    %133 = vector.extract_strided_slice %131 {offsets = [0, 32], sizes = [8, 32], strides = [1, 1]} : vector<8x128xf32> to vector<8x32xf32>
    %134 = vector.extract_strided_slice %131 {offsets = [0, 64], sizes = [8, 32], strides = [1, 1]} : vector<8x128xf32> to vector<8x32xf32>
    %135 = vector.extract_strided_slice %131 {offsets = [0, 96], sizes = [8, 32], strides = [1, 1]} : vector<8x128xf32> to vector<8x32xf32>
    %136 = arith.mulf %133, %123 : vector<8x32xf32>
    %137 = arith.mulf %132, %134 : vector<8x32xf32>
    %138 = arith.addf %136, %137 : vector<8x32xf32>
    %139 = math.tanh %138 : vector<8x32xf32>
    %140 = arith.mulf %135, %139 : vector<8x32xf32>
    %141 = vector.extract_strided_slice %18 {offsets = [64, 0], sizes = [8, 128], strides = [1, 1]} : vector<104x128xf32> to vector<8x128xf32>
    %cst_27 = arith.constant dense<0.000000e+00> : vector<8x128xf32>
    %142 = tpu.matmul %140, %1, %cst_27 {dimension_numbers = #tpu.dot_dimension_numbers<[1], [0], [0], [1], [0, 0, 1, 1], [], []>} : vector<8x32xf32>, vector<32x128xf32>, vector<8x128xf32> -> vector<8x128xf32>
    %143 = arith.addf %141, %142 : vector<8x128xf32>
    %144 = math.tanh %143 : vector<8x128xf32>
    %145 = arith.mulf %144, %12 : vector<8x128xf32>
    %146 = arith.addf %145, %15 : vector<8x128xf32>
    %147 = vector.extract_strided_slice %146 {offsets = [0, 0], sizes = [8, 32], strides = [1, 1]} : vector<8x128xf32> to vector<8x32xf32>
    %148 = vector.extract_strided_slice %146 {offsets = [0, 32], sizes = [8, 32], strides = [1, 1]} : vector<8x128xf32> to vector<8x32xf32>
    %149 = vector.extract_strided_slice %146 {offsets = [0, 64], sizes = [8, 32], strides = [1, 1]} : vector<8x128xf32> to vector<8x32xf32>
    %150 = vector.extract_strided_slice %146 {offsets = [0, 96], sizes = [8, 32], strides = [1, 1]} : vector<8x128xf32> to vector<8x32xf32>
    %151 = arith.mulf %148, %138 : vector<8x32xf32>
    %152 = arith.mulf %147, %149 : vector<8x32xf32>
    %153 = arith.addf %151, %152 : vector<8x32xf32>
    %154 = math.tanh %153 : vector<8x32xf32>
    %155 = arith.mulf %150, %154 : vector<8x32xf32>
    %156 = vector.extract_strided_slice %18 {offsets = [72, 0], sizes = [8, 128], strides = [1, 1]} : vector<104x128xf32> to vector<8x128xf32>
    %cst_28 = arith.constant dense<0.000000e+00> : vector<8x128xf32>
    %157 = tpu.matmul %155, %1, %cst_28 {dimension_numbers = #tpu.dot_dimension_numbers<[1], [0], [0], [1], [0, 0, 1, 1], [], []>} : vector<8x32xf32>, vector<32x128xf32>, vector<8x128xf32> -> vector<8x128xf32>
    %158 = arith.addf %156, %157 : vector<8x128xf32>
    %159 = math.tanh %158 : vector<8x128xf32>
    %160 = arith.mulf %159, %12 : vector<8x128xf32>
    %161 = arith.addf %160, %15 : vector<8x128xf32>
    %162 = vector.extract_strided_slice %161 {offsets = [0, 0], sizes = [8, 32], strides = [1, 1]} : vector<8x128xf32> to vector<8x32xf32>
    %163 = vector.extract_strided_slice %161 {offsets = [0, 32], sizes = [8, 32], strides = [1, 1]} : vector<8x128xf32> to vector<8x32xf32>
    %164 = vector.extract_strided_slice %161 {offsets = [0, 64], sizes = [8, 32], strides = [1, 1]} : vector<8x128xf32> to vector<8x32xf32>
    %165 = vector.extract_strided_slice %161 {offsets = [0, 96], sizes = [8, 32], strides = [1, 1]} : vector<8x128xf32> to vector<8x32xf32>
    %166 = arith.mulf %163, %153 : vector<8x32xf32>
    %167 = arith.mulf %162, %164 : vector<8x32xf32>
    %168 = arith.addf %166, %167 : vector<8x32xf32>
    %169 = math.tanh %168 : vector<8x32xf32>
    %170 = arith.mulf %165, %169 : vector<8x32xf32>
    %171 = vector.extract_strided_slice %18 {offsets = [80, 0], sizes = [8, 128], strides = [1, 1]} : vector<104x128xf32> to vector<8x128xf32>
    %cst_29 = arith.constant dense<0.000000e+00> : vector<8x128xf32>
    %172 = tpu.matmul %170, %1, %cst_29 {dimension_numbers = #tpu.dot_dimension_numbers<[1], [0], [0], [1], [0, 0, 1, 1], [], []>} : vector<8x32xf32>, vector<32x128xf32>, vector<8x128xf32> -> vector<8x128xf32>
    %173 = arith.addf %171, %172 : vector<8x128xf32>
    %174 = math.tanh %173 : vector<8x128xf32>
    %175 = arith.mulf %174, %12 : vector<8x128xf32>
    %176 = arith.addf %175, %15 : vector<8x128xf32>
    %177 = vector.extract_strided_slice %176 {offsets = [0, 0], sizes = [8, 32], strides = [1, 1]} : vector<8x128xf32> to vector<8x32xf32>
    %178 = vector.extract_strided_slice %176 {offsets = [0, 32], sizes = [8, 32], strides = [1, 1]} : vector<8x128xf32> to vector<8x32xf32>
    %179 = vector.extract_strided_slice %176 {offsets = [0, 64], sizes = [8, 32], strides = [1, 1]} : vector<8x128xf32> to vector<8x32xf32>
    %180 = vector.extract_strided_slice %176 {offsets = [0, 96], sizes = [8, 32], strides = [1, 1]} : vector<8x128xf32> to vector<8x32xf32>
    %181 = arith.mulf %178, %168 : vector<8x32xf32>
    %182 = arith.mulf %177, %179 : vector<8x32xf32>
    %183 = arith.addf %181, %182 : vector<8x32xf32>
    %184 = math.tanh %183 : vector<8x32xf32>
    %185 = arith.mulf %180, %184 : vector<8x32xf32>
    %186 = vector.extract_strided_slice %18 {offsets = [88, 0], sizes = [8, 128], strides = [1, 1]} : vector<104x128xf32> to vector<8x128xf32>
    %cst_30 = arith.constant dense<0.000000e+00> : vector<8x128xf32>
    %187 = tpu.matmul %185, %1, %cst_30 {dimension_numbers = #tpu.dot_dimension_numbers<[1], [0], [0], [1], [0, 0, 1, 1], [], []>} : vector<8x32xf32>, vector<32x128xf32>, vector<8x128xf32> -> vector<8x128xf32>
    %188 = arith.addf %186, %187 : vector<8x128xf32>
    %189 = math.tanh %188 : vector<8x128xf32>
    %190 = arith.mulf %189, %12 : vector<8x128xf32>
    %191 = arith.addf %190, %15 : vector<8x128xf32>
    %192 = vector.extract_strided_slice %191 {offsets = [0, 0], sizes = [8, 32], strides = [1, 1]} : vector<8x128xf32> to vector<8x32xf32>
    %193 = vector.extract_strided_slice %191 {offsets = [0, 32], sizes = [8, 32], strides = [1, 1]} : vector<8x128xf32> to vector<8x32xf32>
    %194 = vector.extract_strided_slice %191 {offsets = [0, 64], sizes = [8, 32], strides = [1, 1]} : vector<8x128xf32> to vector<8x32xf32>
    %195 = vector.extract_strided_slice %191 {offsets = [0, 96], sizes = [8, 32], strides = [1, 1]} : vector<8x128xf32> to vector<8x32xf32>
    %196 = arith.mulf %193, %183 : vector<8x32xf32>
    %197 = arith.mulf %192, %194 : vector<8x32xf32>
    %198 = arith.addf %196, %197 : vector<8x32xf32>
    %199 = math.tanh %198 : vector<8x32xf32>
    %200 = arith.mulf %195, %199 : vector<8x32xf32>
    %201 = vector.extract_strided_slice %18 {offsets = [96, 0], sizes = [8, 128], strides = [1, 1]} : vector<104x128xf32> to vector<8x128xf32>
    %cst_31 = arith.constant dense<0.000000e+00> : vector<8x128xf32>
    %202 = tpu.matmul %200, %1, %cst_31 {dimension_numbers = #tpu.dot_dimension_numbers<[1], [0], [0], [1], [0, 0, 1, 1], [], []>} : vector<8x32xf32>, vector<32x128xf32>, vector<8x128xf32> -> vector<8x128xf32>
    %203 = arith.addf %201, %202 : vector<8x128xf32>
    %204 = math.tanh %203 : vector<8x128xf32>
    %205 = arith.mulf %204, %12 : vector<8x128xf32>
    %206 = arith.addf %205, %15 : vector<8x128xf32>
    %207 = vector.extract_strided_slice %206 {offsets = [0, 0], sizes = [8, 32], strides = [1, 1]} : vector<8x128xf32> to vector<8x32xf32>
    %208 = vector.extract_strided_slice %206 {offsets = [0, 32], sizes = [8, 32], strides = [1, 1]} : vector<8x128xf32> to vector<8x32xf32>
    %209 = vector.extract_strided_slice %206 {offsets = [0, 64], sizes = [8, 32], strides = [1, 1]} : vector<8x128xf32> to vector<8x32xf32>
    %210 = vector.extract_strided_slice %206 {offsets = [0, 96], sizes = [8, 32], strides = [1, 1]} : vector<8x128xf32> to vector<8x32xf32>
    %211 = arith.mulf %208, %198 : vector<8x32xf32>
    %212 = arith.mulf %207, %209 : vector<8x32xf32>
    %213 = arith.addf %211, %212 : vector<8x32xf32>
    %214 = math.tanh %213 : vector<8x32xf32>
    %215 = arith.mulf %210, %214 : vector<8x32xf32>
    %216 = tpu.concatenate %155, %170, %185, %200, %215 in 0 : vector<8x32xf32>, vector<8x32xf32>, vector<8x32xf32>, vector<8x32xf32>, vector<8x32xf32> -> vector<40x32xf32>
    %cst_32 = arith.constant 0.000000e+00 : f32
    %217 = vector.broadcast %cst_32 : f32 to vector<40x32xf32>
    %218 = arith.maximumf %216, %217 : vector<40x32xf32>
    %cst_33 = arith.constant dense<0.000000e+00> : vector<40x6xf32>
    %219 = tpu.matmul %218, %2, %cst_33 {dimension_numbers = #tpu.dot_dimension_numbers<[1], [0], [0], [1], [0, 0, 1, 1], [], []>} : vector<40x32xf32>, vector<32x6xf32>, vector<40x6xf32> -> vector<40x6xf32>
    %220 = vector.broadcast %3 : vector<1x6xf32> to vector<40x6xf32>
    %221 = arith.addf %219, %220 : vector<40x6xf32>
    %c0_34 = arith.constant 0 : index
    %c0_35 = arith.constant 0 : index
    %222 = vector.load %arg8[%c0_34, %c0_35] : memref<40x6xf32, #tpu.memory_space<vmem>>, vector<40x6xf32>
    tpu.vector_store %arg8[%c0_34, %c0_35], %221 {strides = array<i32>} : memref<40x6xf32, #tpu.memory_space<vmem>>, vector<40x6xf32>,
    return
  }
}

</mosaic_0001>

<bundles_post_ra>
// kernel: maize_lstm_forward.1
= control target key start
LH: loop header
LB: loop body
LE: loop exit
PB: predicated region body
PF: predicated region fallthrough
CT: control target
= control target key end

     0   :  { %v2113_v0 = vmov 0.0|0.0   ;;  %vm2114_vm0 = vmmov 0   ;;  %v2115_v3 = vmov 0.0   ;;  %vm64_vm1 = vcmask 130048   ;;  %s2118_s20 = smov 32   ;;  %s2558_s3 = inlined_call_operand.vmem [shape: f32[16,128], index: 3, kind: input, shape index: {}]   ;;  %s2559_s4 = inlined_call_operand.vmem [shape: f32[32,128], index: 4, kind: input, shape index: {}]   ;;  %s2560_s0 = inlined_call_operand.vmem [shape: f32[104,16], index: 0, kind: input, shape index: {}]   ;;  %s2561_s1 = inlined_call_operand.vmem [shape: f32[8,32], index: 1, kind: input, shape index: {}]   ;;  %s2562_s2 = inlined_call_operand.vmem [shape: f32[8,32], index: 2, kind: input, shape index: {}]   ;;  %s2563_s5 = inlined_call_operand.vmem [shape: f32[32,128], index: 5, kind: input, shape index: {}]   ;;  %s2564_s6 = inlined_call_operand.vmem [shape: f32[32,6], index: 6, kind: input, shape index: {}]   ;;  %s2565_s7 = inlined_call_operand.vmem [shape: f32[1,6], index: 7, kind: input, shape index: {}]   ;;  %s2566_s8 = inlined_call_operand.vmem [shape: f32[40,6], index: 8, kind: output, shape index: {}]  }
   0x1   :  { %1953 = vmatprep.subr.bf16.mxu1 %v2113_v0  ;;  %v62_v1 = vld [vmem:[%s2558_s3] sm:$0xff]  ;;  %v63_v2 = vld [vmem:[%s2558_s3 + $0x8] sm:$0xff]  ;;  %1748 = vmatprep.mubr.msk.f32.mxu1 %vm2114_vm0, %v2115_v3  ;;  %v31_v9 = vld [vmem:[%s2559_s4 + $0x10] sm:$0xff]  ;;  %vm236_vm2 = vcmask 261120   ;;  %v42_v45 = vlaneseq  ;;  %v2116_v51 = vmov 0.5   ;;  %vm1613_vm6 = vcmask 48128  }
   0x2   :  { %v1954_v4 = vpack.c.bf16 %v63_v2, %v62_v1  ;;  %v29_v5 = vld [vmem:[%s2559_s4] sm:$0xff]  ;;  %v30_v6 = vld [vmem:[%s2559_s4 + $0x8] sm:$0xff]  ;;  %1968 = vmatprep.subr.bf16.mxu0 %v2113_v0  ;;  %1817 = vmatprep.mubr.msk.f32.mxu0 %vm2114_vm0, %v2115_v3  ;;  %v32_v10 = vld [vmem:[%s2559_s4 + $0x18] sm:$0xff] }
   0x3   :  { %v2182_v7 = vpack.c.bf16 %v30_v6, %v29_v5  ;;  %v49_v8 = vld [vmem:[%s2560_s0] sm:$0xff]  ;;  %v2197_v11 = vpack.c.bf16 %v32_v10, %v31_v9  ;;  %v50_v12 = vld [vmem:[%s2560_s0 + $0x8] sm:$0xff]  ;;  %v51_v13 = vld [vmem:[%s2560_s0 + $0x10] sm:$0xff]  ;;  %v43_v48 = vand.u32 127, %v42_v45 }
   0x4   :  { %1955 = vmatpush3.bf16.msra.mxu1 %v1954_v4  ;;  %v52_v14 = vld [vmem:[%s2560_s0 + $0x18] sm:$0xff]  ;;  %v53_v15 = vld [vmem:[%s2560_s0 + $0x20] sm:$0xff]  ;;  %v54_v16 = vld [vmem:[%s2560_s0 + $0x28] sm:$0xff] }
   0x5   :  { %1956 = vmatprep.subr.bf16.mxu1 %v2113_v0  ;;  %1970 = vmatpush3.bf16.msra.mxu0 %v2182_v7  ;;  %v55_v17 = vld [vmem:[%s2560_s0 + $0x30] sm:$0xff]  ;;  %v56_v18 = vld [vmem:[%s2560_s0 + $0x38] sm:$0xff]  ;;  %v57_v19 = vld [vmem:[%s2560_s0 + $0x40] sm:$0xff]  ;;  %vm44_vm3 = vcmp.ge.s32.totalorder %v43_v48, 64  ;;  %vm45_vm4 = vcmp.lt.s32.totalorder %v43_v48, 96 }
   0x6   :  { %1971 = vmatprep.subr.bf16.mxu0 %v2113_v0  ;;  %v58_v20 = vld [vmem:[%s2560_s0 + $0x48] sm:$0xff]  ;;  %v59_v21 = vld [vmem:[%s2560_s0 + $0x50] sm:$0xff]  ;;  %v60_v22 = vld [vmem:[%s2560_s0 + $0x58] sm:$0xff] }
   0x7   :  { %1749 = vmatmul.mubr.msk.f32.vlgmr.msra.gmra.mrb[0].mxu1 %vm64_vm1, %v49_v8  ;;  %v61_v23 = vld [vmem:[%s2560_s0 + $0x60] sm:$0xff]  ;;  %vm46_vm5 = vmand %vm44_vm3, %vm45_vm4  ;;  %s2117_s0 = smov 64  }
   0x8   :  { %1958 = vmatpush3.bf16.msra.mxu1 %v2182_v7  ;;  %1751 = vmatprep.mubr.msk.f32.mxu1 %vm2114_vm0, %v2115_v3  ;;  %v234_v24 = vld [vmem:[%s2561_s1] sm:$0xff]  ;;  %v2311_v52 = vsel %vm46_vm5, 1.0, %v2116_v51  ;;  %v2313_v54 = vsel %vm46_vm5, 0.0, %v2116_v51 }
   0x9   :  { %1959 = vmatprep.subr.bf16.mxu1 %v2113_v0  ;;  %1973 = vmatpush3.bf16.msra.mxu0 %v2197_v11  ;;  %v235_v57 = vld [vmem:[%s2562_s2] sm:$0xff] }
   0xa   :  { %1974 = vmatprep.subr.bf16.mxu0 %v2113_v0 }
   0xb   :  { %1752 = vmatmul.mubr.msk.f32.gmra.mrb[2].mxu1 %vm64_vm1, %v50_v12 }
   0xc   :  { %1754 = vmatprep.mubr.msk.f32.mxu1 %vm2114_vm0, %v2115_v3  ;;  %1961 = vmatpush3.bf16.msra.mxu1 %v2197_v11 }
   0xd   :  { %1962 = vmatprep.subr.bf16.mxu1 %v2113_v0 }
   0xf   :  { %1755 = vmatmul.mubr.msk.f32.gmra.mrb[4].mxu1 %vm64_vm1, %v51_v13 }
  0x10   :  { %1757 = vmatprep.mubr.msk.f32.mxu1 %vm2114_vm0, %v2115_v3 }
  0x13   :  { %1758 = vmatmul.mubr.msk.f32.gmra.mrb[6].mxu1 %vm64_vm1, %v52_v14 }
  0x14   :  { %1760 = vmatprep.mubr.msk.f32.mxu1 %vm2114_vm0, %v2115_v3 }
  0x17   :  { %1761 = vmatmul.mubr.msk.f32.gmra.mrb[8].mxu1 %vm64_vm1, %v53_v15 }
  0x18   :  { %1763 = vmatprep.mubr.msk.f32.mxu1 %vm2114_vm0, %v2115_v3 }
  0x1b   :  { %1764 = vmatmul.mubr.msk.f32.gmra.mrb[10].mxu1 %vm64_vm1, %v54_v16 }
  0x1c   :  { %1766 = vmatprep.mubr.msk.f32.mxu1 %vm2114_vm0, %v2115_v3 }
  0x1f   :  { %1767 = vmatmul.mubr.msk.f32.gmra.mrb[12].mxu1 %vm64_vm1, %v55_v17 }
  0x20   :  { %1769 = vmatprep.mubr.msk.f32.mxu1 %vm2114_vm0, %v2115_v3 }
  0x23   :  { %1770 = vmatmul.mubr.msk.f32.gmra.mrb[14].mxu1 %vm64_vm1, %v56_v18 }
  0x24   :  { %1772 = vmatprep.mubr.msk.f32.mxu1 %vm2114_vm0, %v2115_v3 }
  0x27   :  { %1773 = vmatmul.mubr.msk.f32.gmra.mrb[16].mxu1 %vm64_vm1, %v57_v19 }
  0x28   :  { %1775 = vmatprep.mubr.msk.f32.mxu1 %vm2114_vm0, %v2115_v3 }
  0x2b   :  { %1776 = vmatmul.mubr.msk.f32.gmra.mrb[18].mxu1 %vm64_vm1, %v58_v20 }
  0x2c   :  { %1778 = vmatprep.mubr.msk.f32.mxu1 %vm2114_vm0, %v2115_v3 }
  0x2f   :  { %1779 = vmatmul.mubr.msk.f32.gmra.mrb[20].mxu1 %vm64_vm1, %v59_v21 }
  0x30   :  { %1781 = vmatprep.mubr.msk.f32.mxu1 %vm2114_vm0, %v2115_v3 }
  0x33   :  { %1782 = vmatmul.mubr.msk.f32.gmra.mrb[22].mxu1 %vm64_vm1, %v60_v22 }
  0x34   :  { %1784 = vmatprep.mubr.msk.f32.mxu1 %vm2114_vm0, %v2115_v3 }
  0x37   :  { %1785 = vmatmul.mubr.msk.f32.gmra.mrb[24].mxu1 %vm64_vm1, %v61_v23 }
  0x38   :  { %1795 = vmatprep.mubr.msk.f32.mxu1 %vm2114_vm0, %v2115_v3 }
  0x3b   :  { %1796 = vmatmul.mubr.msk.f32.vlgmr.msra.gmra.mrb[0].mxu1 %vm236_vm2, %v234_v24 }
  0x3c   :  { %1964 = vmatpush3.bf16.msra.mxu1 %v2182_v7  ;;  %1806 = vmatprep.mubr.msk.f32.mxu1 %vm2114_vm0, %v2115_v3 }
  0x3d   :  { %1965 = vmatprep.subr.bf16.mxu1 %v2113_v0 }
  0x40   :  { %1967 = vmatpush3.bf16.msra.mxu1 %v2197_v11 }
  0x41   :  { %2034 = vmatprep.subr.bf16.mxu1 %v2113_v0 }
  0xe2   :  { %v2289_v25 = vpop.f32.mrb[4].mxu1 }
  0xe3   :  { %v1756_v26 = vpop.f32.mrb[5].mxu1 }
  0xe6   :  { %v2291_v27 = vpop.f32.mrb[6].mxu1 }
  0xe7   :  { %v1759_v28 = vpop.f32.mrb[7].mxu1 }
  0xea   :  { %v2293_v29 = vpop.f32.mrb[8].mxu1 }
  0xeb   :  { %v1762_v30 = vpop.f32.mrb[9].mxu1 }
  0xee   :  { %v2295_v31 = vpop.f32.mrb[10].mxu1 }
  0xef   :  { %v1765_v32 = vpop.f32.mrb[11].mxu1 }
  0xf2   :  { %v2297_v33 = vpop.f32.mrb[12].mxu1 }
  0xf3   :  { %v1768_v34 = vpop.f32.mrb[13].mxu1 }
  0xf6   :  { %v2299_v35 = vpop.f32.mrb[14].mxu1 }
  0xf7   :  { %v1771_v36 = vpop.f32.mrb[15].mxu1 }
  0xfa   :  { %v2301_v37 = vpop.f32.mrb[16].mxu1 }
  0xfb   :  { %v1774_v38 = vpop.f32.mrb[17].mxu1 }
  0xfe   :  { %v2303_v39 = vpop.f32.mrb[18].mxu1 }
  0xff   :  { %v1777_v40 = vpop.f32.mrb[19].mxu1 }
 0x102   :  { %v2305_v41 = vpop.f32.mrb[20].mxu1 }
 0x103   :  { %v1780_v42 = vpop.f32.mrb[21].mxu1 }
 0x106   :  { %v2307_v43 = vpop.f32.mrb[22].mxu1 }
 0x107   :  { %v1783_v44 = vpop.f32.mrb[23].mxu1 }
 0x10a   :  { %v2309_v46 = vpop.f32.mrb[24].mxu1 }
 0x10b   :  { %v1786_v47 = vpop.f32.mrb[25].mxu1 }
 0x10e   :  { %v306_v49 = vpop.f32.mrb[0].mxu1 }
 0x10f   :  { %2061 = vtanh.f32 %v306_v49  ;;  %v1797_v50 = vpop.f32.mrb[1].mxu1 }
 0x119   :  { %v2062_v53 = vpop.eup %2061 }
 0x11a   :  { %v312_v55 = vmul.f32 %v2062_v53, %v2311_v52 }
 0x11c   :  { %v313_v56 = vadd.f32 %v312_v55, %v2313_v54 }
 0x11e   :  { %320 = vrot.lane.b32.xlu0 %v313_v56, %s2117_s0 }
 0x122   :  { %315 = vrot.lane.b32.xlu0 %v235_v57, %s2118_s20 }
 0x190   :  { %v321_v58 = vpop.permute.xlu0 %320 }
 0x191   :  { %v323_v59 = vmul.f32 %v321_v58, %v313_v56 }
 0x193   :  { %325 = vrot.lane.b32.xlu1 %v323_v59, %s2118_s20 }
 0x194   :  { %v316_v60 = vpop.permute.xlu0 %315 }
 0x195   :  { %v318_v61 = vmul.f32 %v316_v60, %v313_v56 }
 0x205   :  { %v326_v62 = vpop.permute.xlu1 %325 }
 0x206   :  { %v328_v63 = vadd.f32 %v326_v62, %v318_v61 }
 0x208   :  { %2063 = vtanh.f32 %v328_v63 }
 0x212   :  { %v2064_v1 = vpop.eup %2063 }
 0x213   :  { %331 = vrot.lane.b32.xlu1 %v2064_v1, %s2117_s0 }
 0x285   :  { %v332_v2 = vpop.permute.xlu1 %331 }
 0x286   :  { %v334_v4 = vmul.f32 %v332_v2, %v313_v56 }
 0x288   :  { %336 = vrot.lane.b32.xlu0 %v334_v4, %s2118_s20 }
 0x2fa   :  { %v337_v5 = vpop.permute.xlu0 %336 }
 0x2fb   :  { %1807 = vmatmul.mubr.msk.f32.vlgmr.msra.gmra.mrb[2].mxu1 %vm236_vm2, %v337_v5 }
 0x2fc   :  { %1938 = vmatprep.mubr.msk.f32.mxu1 %vm2114_vm0, %v2115_v3 }
 0x3ce   :  { %v406_v6 = vpop.f32.mrb[2].mxu1 }
 0x3cf   :  { %2065 = vtanh.f32 %v406_v6  ;;  %v1808_v8 = vpop.f32.mrb[3].mxu1 }
 0x3d9   :  { %v2066_v9 = vpop.eup %2065 }
 0x3da   :  { %v412_v10 = vmul.f32 %v2066_v9, %v2311_v52 }
 0x3dc   :  { %v413_v12 = vadd.f32 %v412_v10, %v2313_v54 }
 0x3de   :  { %416 = vrot.lane.b32.xlu1 %v413_v12, %s2117_s0  ;;  %v414_v15 = vmul.f32 %v413_v12, %v328_v63 }
 0x450   :  { %v417_v13 = vpop.permute.xlu1 %416 }
 0x451   :  { %v419_v14 = vmul.f32 %v417_v13, %v413_v12 }
 0x453   :  { %421 = vrot.lane.b32.xlu0 %v419_v14, %s2118_s20 }
 0x4c5   :  { %v422_v16 = vpop.permute.xlu0 %421 }
 0x4c6   :  { %v424_v17 = vadd.f32 %v422_v16, %v414_v15 }
 0x4c8   :  { %2067 = vtanh.f32 %v424_v17 }
 0x4d2   :  { %v2068_v18 = vpop.eup %2067 }
 0x4d3   :  { %427 = vrot.lane.b32.xlu1 %v2068_v18, %s2117_s0 }
 0x545   :  { %v428_v19 = vpop.permute.xlu1 %427 }
 0x546   :  { %v430_v20 = vmul.f32 %v428_v19, %v413_v12 }
 0x548   :  { %432 = vrot.lane.b32.xlu0 %v430_v20, %s2118_s20 }
 0x5ba   :  { %v433_v21 = vpop.permute.xlu0 %432 }
 0x5bb   :  { %1818 = vmatmul.mubr.msk.f32.vlgmr.msra.gmra.mrb[0].mxu0 %vm236_vm2, %v433_v21 }
 0x5bc   :  { %1976 = vmatpush3.bf16.msra.mxu0 %v2182_v7  ;;  %1828 = vmatprep.mubr.msk.f32.mxu0 %vm2114_vm0, %v2115_v3 }
 0x5bd   :  { %1977 = vmatprep.subr.bf16.mxu0 %v2113_v0 }
 0x5c0   :  { %1979 = vmatpush3.bf16.msra.mxu0 %v2197_v11 }
 0x5c1   :  { %1980 = vmatprep.subr.bf16.mxu0 %v2113_v0 }
 0x68e   :  { %v502_v22 = vpop.f32.mrb[0].mxu0 }
 0x68f   :  { %v506_v23 = vadd.f32 %v502_v22, %v2289_v25  ;;  %v1819_v24 = vpop.f32.mrb[1].mxu0 }
 0x691   :  { %2069 = vtanh.f32 %v506_v23 }
 0x69b   :  { %v2070_v26 = vpop.eup %2069 }
 0x69c   :  { %v508_v28 = vmul.f32 %v2070_v26, %v2311_v52 }
 0x69e   :  { %v509_v30 = vadd.f32 %v508_v28, %v2313_v54 }
 0x6a0   :  { %512 = vrot.lane.b32.xlu1 %v509_v30, %s2117_s0  ;;  %v510_v36 = vmul.f32 %v509_v30, %v424_v17 }
 0x712   :  { %v513_v32 = vpop.permute.xlu1 %512 }
 0x713   :  { %v515_v34 = vmul.f32 %v513_v32, %v509_v30 }
 0x715   :  { %517 = vrot.lane.b32.xlu0 %v515_v34, %s2118_s20 }
 0x787   :  { %v518_v38 = vpop.permute.xlu0 %517 }
 0x788   :  { %v520_v40 = vadd.f32 %v518_v38, %v510_v36 }
 0x78a   :  { %2071 = vtanh.f32 %v520_v40 }
 0x794   :  { %v2072_v42 = vpop.eup %2071 }
 0x795   :  { %523 = vrot.lane.b32.xlu1 %v2072_v42, %s2117_s0 }
 0x807   :  { %v524_v25 = vpop.permute.xlu1 %523 }
 0x808   :  { %v526_v44 = vmul.f32 %v524_v25, %v509_v30 }
 0x80a   :  { %528 = vrot.lane.b32.xlu0 %v526_v44, %s2118_s20 }
 0x87c   :  { %v529_v45 = vpop.permute.xlu0 %528 }
 0x87d   :  { %1829 = vmatmul.mubr.msk.f32.vlgmr.msra.gmra.mrb[2].mxu0 %vm236_vm2, %v529_v45 }
 0x87e   :  { %1982 = vmatpush3.bf16.msra.mxu0 %v2182_v7  ;;  %1839 = vmatprep.mubr.msk.f32.mxu0 %vm2114_vm0, %v2115_v3 }
 0x87f   :  { %1983 = vmatprep.subr.bf16.mxu0 %v2113_v0 }
 0x882   :  { %1985 = vmatpush3.bf16.msra.mxu0 %v2197_v11 }
 0x883   :  { %1986 = vmatprep.subr.bf16.mxu0 %v2113_v0 }
 0x950   :  { %v598_v47 = vpop.f32.mrb[2].mxu0 }
 0x951   :  { %v602_v48 = vadd.f32 %v598_v47, %v2291_v27  ;;  %v1830_v49 = vpop.f32.mrb[3].mxu0 }
 0x953   :  { %2073 = vtanh.f32 %v602_v48 }
 0x95d   :  { %v2074_v50 = vpop.eup %2073 }
 0x95e   :  { %v604_v51 = vmul.f32 %v2074_v50, %v2311_v52 }
 0x960   :  { %v605_v53 = vadd.f32 %v604_v51, %v2313_v54 }
 0x962   :  { %608 = vrot.lane.b32.xlu1 %v605_v53, %s2117_s0  ;;  %v606_v57 = vmul.f32 %v605_v53, %v520_v40 }
 0x9d4   :  { %v609_v55 = vpop.permute.xlu1 %608 }
 0x9d5   :  { %v611_v56 = vmul.f32 %v609_v55, %v605_v53 }
 0x9d7   :  { %613 = vrot.lane.b32.xlu0 %v611_v56, %s2118_s20 }
 0xa49   :  { %v614_v58 = vpop.permute.xlu0 %613 }
 0xa4a   :  { %v616_v59 = vadd.f32 %v614_v58, %v606_v57 }
 0xa4c   :  { %2075 = vtanh.f32 %v616_v59 }
 0xa56   :  { %v2076_v60 = vpop.eup %2075 }
 0xa57   :  { %619 = vrot.lane.b32.xlu1 %v2076_v60, %s2117_s0 }
 0xac9   :  { %v620_v27 = vpop.permute.xlu1 %619 }
 0xaca   :  { %v622_v61 = vmul.f32 %v620_v27, %v605_v53 }
 0xacc   :  { %624 = vrot.lane.b32.xlu0 %v622_v61, %s2118_s20 }
 0xb3e   :  { %v625_v62 = vpop.permute.xlu0 %624 }
 0xb3f   :  { %1840 = vmatmul.mubr.msk.f32.vlgmr.msra.gmra.mrb[4].mxu0 %vm236_vm2, %v625_v62 }
 0xb40   :  { %1988 = vmatpush3.bf16.msra.mxu0 %v2182_v7  ;;  %1850 = vmatprep.mubr.msk.f32.mxu0 %vm2114_vm0, %v2115_v3 }
 0xb41   :  { %1989 = vmatprep.subr.bf16.mxu0 %v2113_v0 }
 0xb44   :  { %1991 = vmatpush3.bf16.msra.mxu0 %v2197_v11 }
 0xb45   :  { %1992 = vmatprep.subr.bf16.mxu0 %v2113_v0 }
 0xc12   :  { %v694_v63 = vpop.f32.mrb[4].mxu0 }
 0xc13   :  { %v698_v1 = vadd.f32 %v694_v63, %v2293_v29  ;;  %v1841_v2 = vpop.f32.mrb[5].mxu0 }
 0xc14   :  { %v34_v2 = vld [vmem:[%s2563_s5 + $0x8] sm:$0xff] }
 0xc15   :  { %2077 = vtanh.f32 %v698_v1 }
 0xc1f   :  { %v2078_v4 = vpop.eup %2077 }
 0xc20   :  { %v700_v5 = vmul.f32 %v2078_v4, %v2311_v52  ;;  %v35_v4 = vld [vmem:[%s2563_s5 + $0x10] sm:$0xff] }
 0xc22   :  { %v701_v6 = vadd.f32 %v700_v5, %v2313_v54 }
 0xc24   :  { %704 = vrot.lane.b32.xlu1 %v701_v6, %s2117_s0  ;;  %v702_v10 = vmul.f32 %v701_v6, %v616_v59 }
 0xc96   :  { %v705_v8 = vpop.permute.xlu1 %704 }
 0xc97   :  { %v707_v9 = vmul.f32 %v705_v8, %v701_v6 }
 0xc99   :  { %709 = vrot.lane.b32.xlu0 %v707_v9, %s2118_s20 }
 0xd0b   :  { %v710_v12 = vpop.permute.xlu0 %709 }
 0xd0c   :  { %v712_v13 = vadd.f32 %v710_v12, %v702_v10 }
 0xd0e   :  { %2079 = vtanh.f32 %v712_v13 }
 0xd18   :  { %v2080_v14 = vpop.eup %2079 }
 0xd19   :  { %715 = vrot.lane.b32.xlu1 %v2080_v14, %s2117_s0 }
 0xd8b   :  { %v716_v29 = vpop.permute.xlu1 %715 }
 0xd8c   :  { %v718_v15 = vmul.f32 %v716_v29, %v701_v6  ;;  %v36_v6 = vld [vmem:[%s2563_s5 + $0x18] sm:$0xff] }
 0xd8d   :  { %v2427_v8 = vpack.c.bf16 %v36_v6, %v35_v4 }
 0xd8e   :  { %720 = vrot.lane.b32.xlu0 %v718_v15, %s2118_s20 }
 0xe00   :  { %v721_v16 = vpop.permute.xlu0 %720 }
 0xe01   :  { %1851 = vmatmul.mubr.msk.f32.vlgmr.msra.gmra.mrb[6].mxu0 %vm236_vm2, %v721_v16 }
 0xe02   :  { %1994 = vmatpush3.bf16.msra.mxu0 %v2182_v7  ;;  %1861 = vmatprep.mubr.msk.f32.mxu0 %vm2114_vm0, %v2115_v3 }
 0xe03   :  { %1995 = vmatprep.subr.bf16.mxu0 %v2113_v0 }
 0xe06   :  { %1997 = vmatpush3.bf16.msra.mxu0 %v2197_v11 }
 0xe07   :  { %1998 = vmatprep.subr.bf16.mxu0 %v2113_v0 }
 0xed4   :  { %v790_v17 = vpop.f32.mrb[6].mxu0 }
 0xed5   :  { %v794_v18 = vadd.f32 %v790_v17, %v2295_v31  ;;  %v1852_v19 = vpop.f32.mrb[7].mxu0 }
 0xed7   :  { %2081 = vtanh.f32 %v794_v18 }
 0xee1   :  { %v2082_v20 = vpop.eup %2081 }
 0xee2   :  { %v796_v21 = vmul.f32 %v2082_v20, %v2311_v52 }
 0xee4   :  { %v797_v22 = vadd.f32 %v796_v21, %v2313_v54 }
 0xee6   :  { %800 = vrot.lane.b32.xlu1 %v797_v22, %s2117_s0  ;;  %v798_v26 = vmul.f32 %v797_v22, %v712_v13 }
 0xf58   :  { %v801_v23 = vpop.permute.xlu1 %800 }
 0xf59   :  { %v803_v24 = vmul.f32 %v801_v23, %v797_v22 }
 0xf5b   :  { %805 = vrot.lane.b32.xlu0 %v803_v24, %s2118_s20 }
 0xfcd   :  { %v806_v28 = vpop.permute.xlu0 %805 }
 0xfce   :  { %v808_v30 = vadd.f32 %v806_v28, %v798_v26 }
 0xfd0   :  { %2083 = vtanh.f32 %v808_v30 }
 0xfda   :  { %v2084_v32 = vpop.eup %2083 }
 0xfdb   :  { %811 = vrot.lane.b32.xlu1 %v2084_v32, %s2117_s0 }
0x104d   :  { %v812_v31 = vpop.permute.xlu1 %811 }
0x104e   :  { %v814_v34 = vmul.f32 %v812_v31, %v797_v22 }
0x1050   :  { %816 = vrot.lane.b32.xlu0 %v814_v34, %s2118_s20 }
0x10c2   :  { %v817_v36 = vpop.permute.xlu0 %816 }
0x10c3   :  { %1862 = vmatmul.mubr.msk.f32.vlgmr.msra.gmra.mrb[8].mxu0 %vm236_vm2, %v817_v36 }
0x10c4   :  { %2000 = vmatpush3.bf16.msra.mxu0 %v2182_v7  ;;  %1872 = vmatprep.mubr.msk.f32.mxu0 %vm2114_vm0, %v2115_v3 }
0x10c5   :  { %2001 = vmatprep.subr.bf16.mxu0 %v2113_v0 }
0x10c8   :  { %2003 = vmatpush3.bf16.msra.mxu0 %v2197_v11 }
0x10c9   :  { %2004 = vmatprep.subr.bf16.mxu0 %v2113_v0 }
0x1196   :  { %v886_v38 = vpop.f32.mrb[8].mxu0 }
0x1197   :  { %v890_v40 = vadd.f32 %v886_v38, %v2297_v33  ;;  %v1863_v42 = vpop.f32.mrb[9].mxu0 }
0x1199   :  { %2085 = vtanh.f32 %v890_v40 }
0x11a3   :  { %v2086_v25 = vpop.eup %2085 }
0x11a4   :  { %v892_v44 = vmul.f32 %v2086_v25, %v2311_v52 }
0x11a6   :  { %v893_v45 = vadd.f32 %v892_v44, %v2313_v54 }
0x11a8   :  { %896 = vrot.lane.b32.xlu1 %v893_v45, %s2117_s0  ;;  %v894_v48 = vmul.f32 %v893_v45, %v808_v30 }
0x121a   :  { %v897_v7 = vpop.permute.xlu1 %896 }
0x121b   :  { %v899_v47 = vmul.f32 %v897_v7, %v893_v45 }
0x121d   :  { %901 = vrot.lane.b32.xlu0 %v899_v47, %s2118_s20 }
0x128f   :  { %v902_v11 = vpop.permute.xlu0 %901 }
0x1290   :  { %v904_v49 = vadd.f32 %v902_v11, %v894_v48 }
0x1292   :  { %2087 = vtanh.f32 %v904_v49 }
0x129c   :  { %v2088_v50 = vpop.eup %2087 }
0x129d   :  { %907 = vrot.lane.b32.xlu1 %v2088_v50, %s2117_s0 }
0x130f   :  { %v908_v33 = vpop.permute.xlu1 %907 }
0x1310   :  { %v910_v51 = vmul.f32 %v908_v33, %v893_v45 }
0x1312   :  { %912 = vrot.lane.b32.xlu0 %v910_v51, %s2118_s20 }
0x1384   :  { %v913_v53 = vpop.permute.xlu0 %912 }
0x1385   :  { %1873 = vmatmul.mubr.msk.f32.vlgmr.msra.gmra.mrb[10].mxu0 %vm236_vm2, %v913_v53 }
0x1386   :  { %1883 = vmatprep.mubr.msk.f32.mxu0 %vm2114_vm0, %v2115_v3 }
0x1458   :  { %v982_v55 = vpop.f32.mrb[10].mxu0 }
0x1459   :  { %v986_v56 = vadd.f32 %v982_v55, %v2299_v35  ;;  %v1874_v57 = vpop.f32.mrb[11].mxu0  ;;  %v33_v35 = vld [vmem:[%s2563_s5] sm:$0xff] }
0x145a   :  { %v2421_v5 = vpack.c.bf16 %v34_v2, %v33_v35 }
0x145b   :  { %2089 = vtanh.f32 %v986_v56 }
0x145c   :  { %2006 = vmatpush3.bf16.msra.mxu0 %v2421_v5 }
0x145d   :  { %2007 = vmatprep.subr.bf16.mxu0 %v2113_v0 }
0x1460   :  { %2009 = vmatpush3.bf16.msra.mxu0 %v2427_v8 }
0x1461   :  { %2010 = vmatprep.subr.bf16.mxu0 %v2113_v0 }
0x1465   :  { %v2090_v58 = vpop.eup %2089 }
0x1466   :  { %v988_v59 = vmul.f32 %v2090_v58, %v2311_v52 }
0x1468   :  { %v989_v60 = vadd.f32 %v988_v59, %v2313_v54 }
0x146a   :  { %992 = vrot.lane.b32.xlu1 %v989_v60, %s2117_s0  ;;  %v990_v62 = vmul.f32 %v989_v60, %v904_v49 }
0x14dc   :  { %v993_v27 = vpop.permute.xlu1 %992 }
0x14dd   :  { %v995_v61 = vmul.f32 %v993_v27, %v989_v60 }
0x14df   :  { %997 = vrot.lane.b32.xlu0 %v995_v61, %s2118_s20 }
0x1551   :  { %v998_v63 = vpop.permute.xlu0 %997 }
0x1552   :  { %v1000_v1 = vadd.f32 %v998_v63, %v990_v62 }
0x1554   :  { %2091 = vtanh.f32 %v1000_v1 }
0x155e   :  { %v2092_v9 = vpop.eup %2091 }
0x155f   :  { %1003 = vrot.lane.b32.xlu1 %v2092_v9, %s2117_s0 }
0x15d1   :  { %v1004_v10 = vpop.permute.xlu1 %1003 }
0x15d2   :  { %v1006_v12 = vmul.f32 %v1004_v10, %v989_v60 }
0x15d4   :  { %1008 = vrot.lane.b32.xlu0 %v1006_v12, %s2118_s20 }
0x1646   :  { %v1009_v13 = vpop.permute.xlu0 %1008 }
0x1647   :  { %1884 = vmatmul.mubr.msk.f32.vlgmr.msra.gmra.mrb[12].mxu0 %vm236_vm2, %v1009_v13 }
0x1648   :  { %2012 = vmatpush3.bf16.msra.mxu0 %v2421_v5  ;;  %1894 = vmatprep.mubr.msk.f32.mxu0 %vm2114_vm0, %v2115_v3 }
0x1649   :  { %2013 = vmatprep.subr.bf16.mxu0 %v2113_v0 }
0x164c   :  { %2015 = vmatpush3.bf16.msra.mxu0 %v2427_v8 }
0x164d   :  { %2016 = vmatprep.subr.bf16.mxu0 %v2113_v0 }
0x171a   :  { %v1078_v14 = vpop.f32.mrb[12].mxu0 }
0x171b   :  { %v1082_v29 = vadd.f32 %v1078_v14, %v2301_v37  ;;  %v1885_v15 = vpop.f32.mrb[13].mxu0 }
0x171d   :  { %2093 = vtanh.f32 %v1082_v29 }
0x1727   :  { %v2094_v16 = vpop.eup %2093 }
0x1728   :  { %v1084_v17 = vmul.f32 %v2094_v16, %v2311_v52 }
0x172a   :  { %v1085_v18 = vadd.f32 %v1084_v17, %v2313_v54 }
0x172c   :  { %1088 = vrot.lane.b32.xlu1 %v1085_v18, %s2117_s0  ;;  %v1086_v21 = vmul.f32 %v1085_v18, %v1000_v1 }
0x179e   :  { %v1089_v19 = vpop.permute.xlu1 %1088 }
0x179f   :  { %v1091_v20 = vmul.f32 %v1089_v19, %v1085_v18 }
0x17a1   :  { %1093 = vrot.lane.b32.xlu0 %v1091_v20, %s2118_s20  ;;  %v37_v20 = vld [vmem:[%s2564_s6] sm:$0xff] }
0x1813   :  { %v1094_v22 = vpop.permute.xlu0 %1093 }
0x1814   :  { %v1096_v23 = vadd.f32 %v1094_v22, %v1086_v21  ;;  %v38_v21 = vld [vmem:[%s2564_s6 + $0x8] sm:$0xff] }
0x1815   :  { %v2035_v22 = vpack.c.bf16 %v38_v21, %v37_v20 }
0x1816   :  { %2095 = vtanh.f32 %v1096_v23 }
0x1817   :  { %2036 = vmatpush3.bf16.msra.mxu1 %v2035_v22 }
0x1818   :  { %2037 = vmatprep.subr.bf16.mxu1 %v2113_v0 }
0x1820   :  { %v2096_v24 = vpop.eup %2095 }
0x1821   :  { %1099 = vrot.lane.b32.xlu1 %v2096_v24, %s2117_s0 }
0x1893   :  { %v1100_v37 = vpop.permute.xlu1 %1099 }
0x1894   :  { %v2447_v26 = vmul.f32 %v1100_v37, %v1085_v18 }
0x1896   :  { %1104 = vrot.lane.b32.xlu0 %v2447_v26, %s2118_s20  ;;  %v1487_v37 = vmax.f32 %v2447_v26, 0.0 }
0x1908   :  { %v1105_v28 = vpop.permute.xlu0 %1104 }
0x1909   :  { %1895 = vmatmul.mubr.msk.f32.vlgmr.msra.gmra.mrb[14].mxu0 %vm236_vm2, %v1105_v28 }
0x190a   :  { %2018 = vmatpush3.bf16.msra.mxu0 %v2421_v5  ;;  %1905 = vmatprep.mubr.msk.f32.mxu0 %vm2114_vm0, %v2115_v3 }
0x190b   :  { %2019 = vmatprep.subr.bf16.mxu0 %v2113_v0 }
0x190e   :  { %2021 = vmatpush3.bf16.msra.mxu0 %v2427_v8 }
0x190f   :  { %2022 = vmatprep.subr.bf16.mxu0 %v2113_v0 }
0x19dc   :  { %v1174_v30 = vpop.f32.mrb[14].mxu0 }
0x19dd   :  { %v1178_v32 = vadd.f32 %v1174_v30, %v2303_v39  ;;  %v1896_v31 = vpop.f32.mrb[15].mxu0 }
0x19df   :  { %2097 = vtanh.f32 %v1178_v32 }
0x19e9   :  { %v2098_v34 = vpop.eup %2097 }
0x19ea   :  { %v1180_v36 = vmul.f32 %v2098_v34, %v2311_v52 }
0x19ec   :  { %v1181_v38 = vadd.f32 %v1180_v36, %v2313_v54 }
0x19ee   :  { %1184 = vrot.lane.b32.xlu1 %v1181_v38, %s2117_s0  ;;  %v1182_v25 = vmul.f32 %v1181_v38, %v1096_v23 }
0x1a60   :  { %v1185_v40 = vpop.permute.xlu1 %1184 }
0x1a61   :  { %v1187_v42 = vmul.f32 %v1185_v40, %v1181_v38 }
0x1a63   :  { %1189 = vrot.lane.b32.xlu0 %v1187_v42, %s2118_s20 }
0x1ad5   :  { %v1190_v44 = vpop.permute.xlu0 %1189 }
0x1ad6   :  { %v1192_v45 = vadd.f32 %v1190_v44, %v1182_v25 }
0x1ad8   :  { %2099 = vtanh.f32 %v1192_v45 }
0x1ae2   :  { %v2100_v7 = vpop.eup %2099 }
0x1ae3   :  { %1195 = vrot.lane.b32.xlu1 %v2100_v7, %s2117_s0  ;;  %v1649_v7 = vld [vmem:[%s2565_s7] ss:$0 sm:$0xff] }
0x1b55   :  { %v1196_v39 = vpop.permute.xlu1 %1195 }
0x1b56   :  { %v2464_v47 = vmul.f32 %v1196_v39, %v1181_v38 }
0x1b58   :  { %1200 = vrot.lane.b32.xlu0 %v2464_v47, %s2118_s20  ;;  %v1488_v26 = vmax.f32 %v2464_v47, 0.0 }
0x1bca   :  { %v1201_v48 = vpop.permute.xlu0 %1200 }
0x1bcb   :  { %1906 = vmatmul.mubr.msk.f32.vlgmr.msra.gmra.mrb[16].mxu0 %vm236_vm2, %v1201_v48 }
0x1bcc   :  { %2024 = vmatpush3.bf16.msra.mxu0 %v2421_v5  ;;  %1916 = vmatprep.mubr.msk.f32.mxu0 %vm2114_vm0, %v2115_v3 }
0x1bcd   :  { %2025 = vmatprep.subr.bf16.mxu0 %v2113_v0 }
0x1bd0   :  { %2027 = vmatpush3.bf16.msra.mxu0 %v2427_v8 }
0x1bd1   :  { %2028 = vmatprep.subr.bf16.mxu0 %v2113_v0 }
0x1c9e   :  { %v1270_v11 = vpop.f32.mrb[16].mxu0 }
0x1c9f   :  { %v1274_v49 = vadd.f32 %v1270_v11, %v2305_v41  ;;  %v1907_v50 = vpop.f32.mrb[17].mxu0 }
0x1ca1   :  { %2101 = vtanh.f32 %v1274_v49 }
0x1cab   :  { %v2102_v33 = vpop.eup %2101 }
0x1cac   :  { %v1276_v51 = vmul.f32 %v2102_v33, %v2311_v52 }
0x1cae   :  { %v1277_v53 = vadd.f32 %v1276_v51, %v2313_v54 }
0x1cb0   :  { %1280 = vrot.lane.b32.xlu1 %v1277_v53, %s2117_s0  ;;  %v1278_v57 = vmul.f32 %v1277_v53, %v1192_v45 }
0x1d22   :  { %v1281_v55 = vpop.permute.xlu1 %1280 }
0x1d23   :  { %v1283_v56 = vmul.f32 %v1281_v55, %v1277_v53 }
0x1d25   :  { %1285 = vrot.lane.b32.xlu0 %v1283_v56, %s2118_s20 }
0x1d97   :  { %v1286_v58 = vpop.permute.xlu0 %1285 }
0x1d98   :  { %v1288_v59 = vadd.f32 %v1286_v58, %v1278_v57 }
0x1d9a   :  { %2103 = vtanh.f32 %v1288_v59 }
0x1da4   :  { %v2104_v60 = vpop.eup %2103 }
0x1da5   :  { %1291 = vrot.lane.b32.xlu1 %v2104_v60, %s2117_s0 }
0x1e17   :  { %v1292_v41 = vpop.permute.xlu1 %1291 }
0x1e18   :  { %v1294_v27 = vmul.f32 %v1292_v41, %v1277_v53 }
0x1e1a   :  { %1296 = vrot.lane.b32.xlu0 %v1294_v27, %s2118_s20  ;;  %v1489_v28 = vmax.f32 %v1294_v27, 0.0 }
0x1e8c   :  { %v1297_v61 = vpop.permute.xlu0 %1296 }
0x1e8d   :  { %1917 = vmatmul.mubr.msk.f32.vlgmr.msra.gmra.mrb[18].mxu0 %vm236_vm2, %v1297_v61 }
0x1e8e   :  { %2030 = vmatpush3.bf16.msra.mxu0 %v2421_v5  ;;  %1927 = vmatprep.mubr.msk.f32.mxu0 %vm2114_vm0, %v2115_v3 }
0x1e8f   :  { %2031 = vmatprep.subr.bf16.mxu0 %v2113_v0 }
0x1e92   :  { %2033 = vmatpush3.bf16.msra.mxu0 %v2427_v8 }
0x1f60   :  { %v1366_v62 = vpop.f32.mrb[18].mxu0 }
0x1f61   :  { %v1370_v63 = vadd.f32 %v1366_v62, %v2307_v43  ;;  %v1918_v1 = vpop.f32.mrb[19].mxu0 }
0x1f63   :  { %2105 = vtanh.f32 %v1370_v63 }
0x1f6d   :  { %v2106_v35 = vpop.eup %2105 }
0x1f6e   :  { %v1372_v2 = vmul.f32 %v2106_v35, %v2311_v52 }
0x1f70   :  { %v1373_v4 = vadd.f32 %v1372_v2, %v2313_v54 }
0x1f72   :  { %1376 = vrot.lane.b32.xlu1 %v1373_v4, %s2117_s0  ;;  %v1374_v9 = vmul.f32 %v1373_v4, %v1288_v59 }
0x1fe4   :  { %v1377_v5 = vpop.permute.xlu1 %1376 }
0x1fe5   :  { %v1379_v6 = vmul.f32 %v1377_v5, %v1373_v4 }
0x1fe7   :  { %1381 = vrot.lane.b32.xlu0 %v1379_v6, %s2118_s20 }
0x2059   :  { %v1382_v10 = vpop.permute.xlu0 %1381 }
0x205a   :  { %v1384_v12 = vadd.f32 %v1382_v10, %v1374_v9 }
0x205c   :  { %2107 = vtanh.f32 %v1384_v12 }
0x2066   :  { %v2108_v8 = vpop.eup %2107 }
0x2067   :  { %1387 = vrot.lane.b32.xlu1 %v2108_v8, %s2117_s0 }
0x20d9   :  { %v1388_v43 = vpop.permute.xlu1 %1387 }
0x20da   :  { %v1390_v13 = vmul.f32 %v1388_v43, %v1373_v4 }
0x20dc   :  { %1392 = vrot.lane.b32.xlu0 %v1390_v13, %s2118_s20  ;;  %v1490_v36 = vmax.f32 %v1390_v13, 0.0 }
0x214e   :  { %v1393_v14 = vpop.permute.xlu0 %1392 }
0x214f   :  { %1928 = vmatmul.mubr.msk.f32.vlgmr.msra.gmra.mrb[20].mxu0 %vm236_vm2, %v1393_v14 }
0x2222   :  { %v1462_v29 = vpop.f32.mrb[20].mxu0 }
0x2223   :  { %v1466_v15 = vadd.f32 %v1462_v29, %v2309_v46  ;;  %v1929_v16 = vpop.f32.mrb[21].mxu0  ;;  %v39_v46 = vld [vmem:[%s2564_s6 + $0x10] sm:$0xff] }
0x2225   :  { %2109 = vtanh.f32 %v1466_v15 }
0x222f   :  { %v2110_v17 = vpop.eup %2109 }
0x2230   :  { %v1468_v18 = vmul.f32 %v2110_v17, %v2311_v52  ;;  %v40_v52 = vld [vmem:[%s2564_s6 + $0x18] sm:$0xff] }
0x2232   :  { %v1469_v19 = vadd.f32 %v1468_v18, %v2313_v54  ;;  %v2038_v54 = vpack.c.bf16 %v40_v52, %v39_v46 }
0x2234   :  { %1472 = vrot.lane.b32.xlu1 %v1469_v19, %s2117_s0  ;;  %2039 = vmatpush3.bf16.msra.mxu1 %v2038_v54  ;;  %v1470_v0 = vmul.f32 %v1469_v19, %v1384_v12 }
0x22a6   :  { %v1473_v23 = vpop.permute.xlu1 %1472 }
0x22a7   :  { %v1475_v24 = vmul.f32 %v1473_v23, %v1469_v19 }
0x22a9   :  { %1477 = vrot.lane.b32.xlu0 %v1475_v24, %s2118_s20 }
0x22ad   :  { %1503 = vrot.lane.b32.xlu0 %v1487_v37, %s2118_s20 }
0x22b1   :  { %1507 = vrot.lane.b32.xlu0 %v1489_v28, %s2118_s20 }
0x231b   :  { %v1478_v30 = vpop.permute.xlu0 %1477 }
0x231c   :  { %v1480_v32 = vadd.f32 %v1478_v30, %v1470_v0 }
0x231e   :  { %2111 = vtanh.f32 %v1480_v32 }
0x231f   :  { %v1504_v31 = vpop.permute.xlu0 %1503 }
0x2320   :  { %1939 = vmatmul.mubr.msk.f32.vlgmr.msra.gmra.mrb[26].mxu1 %vm236_vm2, %v1504_v31 }
0x2321   :  { %1941 = vmatprep.mubr.msk.f32.mxu1 %vm2114_vm0, %v2115_v3 }
0x2323   :  { %v1508_v44 = vpop.permute.xlu0 %1507 }
0x2328   :  { %v2112_v34 = vpop.eup %2111 }
0x2329   :  { %1483 = vrot.lane.b32.xlu1 %v2112_v34, %s2117_s0 }
0x232d   :  { %1505 = vrot.lane.b32.xlu1 %v1488_v26, %s2118_s20 }
0x2331   :  { %1509 = vrot.lane.b32.xlu1 %v1490_v36, %s2118_s20 }
0x239b   :  { %v1484_v38 = vpop.permute.xlu1 %1483 }
0x239c   :  { %v1486_v40 = vmul.f32 %v1484_v38, %v1469_v19 }
0x239e   :  { %v1491_v42 = vmax.f32 %v1486_v40, 0.0 }
0x239f   :  { %v1506_v25 = vpop.permute.xlu1 %1505 }
0x23a0   :  { %1511 = vrot.lane.b32.xlu0 %v1491_v42, %s2118_s20  ;;  %1942 = vmatmul.mubr.msk.f32.gmra.mrb[28].mxu1 %vm236_vm2, %v1506_v25 }
0x23a1   :  { %1944 = vmatprep.mubr.msk.f32.mxu1 %vm2114_vm0, %v2115_v3 }
0x23a3   :  { %v1510_v45 = vpop.permute.xlu1 %1509 }
0x23a4   :  { %1945 = vmatmul.mubr.msk.f32.gmra.mrb[30].mxu1 %vm236_vm2, %v1508_v44 }
0x23a5   :  { %1947 = vmatprep.mubr.msk.f32.mxu1 %vm2114_vm0, %v2115_v3 }
0x23a8   :  { %1948 = vmatmul.mubr.msk.f32.gmra.mrb[32].mxu1 %vm236_vm2, %v1510_v45 }
0x23a9   :  { %1950 = vmatprep.mubr.msk.f32.mxu1 %vm2114_vm0, %v2115_v3 }
0x23f3   :  { %v1589_v39 = vpop.f32.mrb[26].mxu1 }
0x23f4   :  { %v1590_v47 = vadd.f32 %v1649_v7, %v1589_v39  ;;  %v1940_v48 = vpop.f32.mrb[27].mxu1 }
0x23f6   :  { %1614 = vst.msk [vmem:[%s2566_s8] sm:$0xff] %vm1613_vm6, %v1590_v47 }
0x2412   :  { %v1512_v11 = vpop.permute.xlu0 %1511 }
0x2413   :  { %1951 = vmatmul.mubr.msk.f32.gmra.mrb[34].mxu1 %vm236_vm2, %v1512_v11 }
0x2473   :  { %v1594_v49 = vpop.f32.mrb[28].mxu1 }
0x2474   :  { %v1595_v50 = vadd.f32 %v1649_v7, %v1594_v49  ;;  %v1943_v33 = vpop.f32.mrb[29].mxu1 }
0x2476   :  { %1615 = vst.msk [vmem:[%s2566_s8 + $0x8] sm:$0xff] %vm1613_vm6, %v1595_v50 }
0x2477   :  { %v1599_v3 = vpop.f32.mrb[30].mxu1 }
0x2478   :  { %v1600_v51 = vadd.f32 %v1649_v7, %v1599_v3  ;;  %v1946_v53 = vpop.f32.mrb[31].mxu1 }
0x247a   :  { %1616 = vst.msk [vmem:[%s2566_s8 + $0x10] sm:$0xff] %vm1613_vm6, %v1600_v51 }
0x247b   :  { %v1604_v55 = vpop.f32.mrb[32].mxu1 }
0x247c   :  { %v1605_v56 = vadd.f32 %v1649_v7, %v1604_v55  ;;  %v1949_v57 = vpop.f32.mrb[33].mxu1 }
0x247e   :  { %1617 = vst.msk [vmem:[%s2566_s8 + $0x18] sm:$0xff] %vm1613_vm6, %v1605_v56 }
0x24e6   :  { %v1609_v58 = vpop.f32.mrb[34].mxu1 }
0x24e7   :  { %v1610_v59 = vadd.f32 %v1649_v7, %v1609_v58  ;;  %v1952_v60 = vpop.f32.mrb[35].mxu1 }
0x24e9   :  { %1618 = vst.msk [vmem:[%s2566_s8 + $0x20] sm:$0xff] %vm1613_vm6, %v1610_v59 }

</bundles_post_ra>
